<compile_context>
chip_gen: v7x
topology: tpu7x:2x2x1
jax: 0.10.0
libtpu: 0.0.40
codegen_flags: <defaults>
</compile_context>

<pallas_src>
import functools

import jax
import jax.numpy as jnp
from jax.experimental import pallas as pl
from jax.experimental.pallas import tpu as pltpu


def _linear_kernel(x_ref, w_ref, b_ref, o_ref, acc_ref):
    """One (tm, tn) output tile; K is the last ('arbitrary') grid axis."""
    k = pl.program_id(2)

    @pl.when(k == 0)
    def _init():
        acc_ref[...] = jnp.zeros_like(acc_ref)

    # Pure MXU accumulate in the inner loop (bf16 inputs, f32 accumulation).
    acc_ref[...] += jnp.dot(
        x_ref[...], w_ref[...], preferred_element_type=jnp.float32
    )

    @pl.when(k == pl.num_programs(2) - 1)
    def _finalize():
        # Bias added once per output tile, in f32, then cast to the output dtype.
        o_ref[...] = (acc_ref[...] + b_ref[...]).astype(o_ref.dtype)


def _pad_to_multiple(a, multiples):
    pads = tuple((0, (-d) % m) for d, m in zip(a.shape, multiples))
    if any(p[1] for p in pads):
        a = jnp.pad(a, pads)
    return a


@functools.partial(jax.jit, static_argnames=("tm", "tn", "tk"))
def pallas_linear(x, w, b, *, tm=128, tn=128, tk=128):
    """y = x @ w + b via a tiled Pallas TPU matmul (bf16 MXU, f32 accumulate)."""
    batch, in_f = x.shape
    in_f2, out_f = w.shape
    assert in_f == in_f2
    out_dtype = x.dtype

    # Shrink tiles for small problems while keeping (8, 128) alignment.
    tm = min(tm, ((batch + 7) // 8) * 8)
    tn = min(tn, ((out_f + 127) // 128) * 128)
    tk = min(tk, ((in_f + 127) // 128) * 128)

    # bf16 matmul inputs (MXU-native on all generations); bias stays f32.
    xp = _pad_to_multiple(x.astype(jnp.bfloat16), (tm, tk))
    wp = _pad_to_multiple(w.astype(jnp.bfloat16), (tk, tn))
    bp = _pad_to_multiple(b.reshape(1, out_f).astype(jnp.float32), (1, tn))

    M, K = xp.shape
    _, N = wp.shape

    out = pl.pallas_call(
        _linear_kernel,
        out_shape=jax.ShapeDtypeStruct((M, N), out_dtype),
        grid=(M // tm, N // tn, K // tk),
        in_specs=[
            pl.BlockSpec((tm, tk), lambda i, j, k: (i, k)),   # x tile
            pl.BlockSpec((tk, tn), lambda i, j, k: (k, j)),   # w tile
            pl.BlockSpec((1, tn), lambda i, j, k: (0, j)),    # bias: keyed on N only
        ],
        out_specs=pl.BlockSpec((tm, tn), lambda i, j, k: (i, j)),
        scratch_shapes=[pltpu.VMEM((tm, tn), jnp.float32)],
        compiler_params=pltpu.CompilerParams(
            dimension_semantics=("parallel", "parallel", "arbitrary"),
        ),
    )(xp, wp, bp)

    # Slice away any lane/sublane padding.
    return out[:batch, :out_f]


class Linear:
    """The wrapped `net`: deterministic-init linear layer backed by the Pallas kernel."""

    def __init__(self, in_features, out_features, key):
        kw, kb = jax.random.split(key)
        scale = 1.0 / jnp.sqrt(jnp.float32(in_features))
        self.w = (jax.random.uniform(kw, (in_features, out_features),
                                     jnp.float32, -1.0, 1.0) * scale)
        self.b = (jax.random.uniform(kb, (out_features,),
                                     jnp.float32, -1.0, 1.0) * scale)

    def __call__(self, x):
        return pallas_linear(x, self.w, self.b)


class Wrap:
    """JAX port of mlmisc.args_sequential.Wrap: calls net, caches and returns result."""

    # TODO(synk): the original Wrap accepts an arbitrary nn.Module; only a Linear
    # hot path is lowered to Pallas here — other nets would need their own kernels.

    def __init__(self, net):
        self.net = net
        self.res = None

    def __call__(self, *args, **kwargs):
        self.res = self.net(*args, **kwargs)
        return self.res


if __name__ == "__main__":
    key = jax.random.PRNGKey(0)
    k_x, k_net = jax.random.split(key)

    # Lane-dense demo shapes: batch multiple of 8, hidden/out multiples of 128,
    # so the kernel stores full vregs and exercises a (1, 2, 2) pipelined grid.
    batch, hidden, out = 128, 256, 256
    x = jax.random.normal(k_x, (batch, hidden), jnp.float32)

    net = Linear(hidden, out, k_net)
    wrapped = Wrap(net)

    y = wrapped(x)
    y = jax.block_until_ready(y)

    # Wrap semantics: result is cached and identical to the returned value.
    assert wrapped.res is y

    # Correctness vs. an identically-quantized reference (bf16 inputs, f32 accum).
    y_ref_bf16 = jnp.dot(x.astype(jnp.bfloat16), net.w.astype(jnp.bfloat16),
                         preferred_element_type=jnp.float32) + net.b
    assert jnp.allclose(y, y_ref_bf16, atol=1e-3, rtol=1e-3)

    # Sanity vs. the full-f32 reference (bf16 inputs => loose tolerance).
    y_ref_f32 = x @ net.w + net.b
    assert jnp.allclose(y, y_ref_f32, atol=3e-2, rtol=3e-2)

    print("KERNEL_OK")
</pallas_src>

<mosaic_0001>
module attributes {stable_mosaic.version = 11 : i64} {
  func.func @_linear_kernel(%arg0: i32, %arg1: i32, %arg2: i32, %arg3: memref<128x128xbf16, #tpu.memory_space<vmem>>, %arg4: memref<128x128xbf16, #tpu.memory_space<vmem>>, %arg5: memref<1x128xf32, #tpu.memory_space<vmem>>, %arg6: memref<128x128xf32, #tpu.memory_space<vmem>>, %arg7: memref<128x128xf32, #tpu.memory_space<vmem>>) attributes {dimension_semantics = [#tpu.dimension_semantics<parallel>, #tpu.dimension_semantics<parallel>, #tpu.dimension_semantics<arbitrary>], iteration_bounds = array<i64: 1, 2, 2>, scalar_prefetch = 0 : i64, scratch_operands = 1 : i64, tpu.core_type = #tpu.core_type<tc>, window_params = [{transform_indices = @transform_0, window_bounds = array<i64: 128, 128>}, {transform_indices = @transform_1, window_bounds = array<i64: 128, 128>}, {transform_indices = @transform_2, window_bounds = array<i64: 1, 128>}, {transform_indices = @transform_3, window_bounds = array<i64: 128, 128>}]} {
    %c0_i32 = arith.constant 0 : i32
    %0 = arith.cmpi eq, %arg2, %c0_i32 : i32
    %1 = arith.extui %0 : i1 to i32
    %c0_i32_0 = arith.constant 0 : i32
    %2 = arith.cmpi ne, %1, %c0_i32_0 : i32
    scf.if %2 {
      %cst_9 = arith.constant 0.000000e+00 : f32
      %12 = vector.broadcast %cst_9 : f32 to vector<128x128xf32>
      %c0_10 = arith.constant 0 : index
      %c0_11 = arith.constant 0 : index
      %13 = vector.load %arg7[%c0_10, %c0_11] : memref<128x128xf32, #tpu.memory_space<vmem>>, vector<128x128xf32>
      tpu.vector_store %arg7[%c0_10, %c0_11], %12 {strides = array<i32>} : memref<128x128xf32, #tpu.memory_space<vmem>>, vector<128x128xf32>,
    } else {
    }
    %c0 = arith.constant 0 : index
    %c0_1 = arith.constant 0 : index
    %3 = vector.load %arg7[%c0, %c0_1] : memref<128x128xf32, #tpu.memory_space<vmem>>, vector<128x128xf32>
    %c0_2 = arith.constant 0 : index
    %c0_3 = arith.constant 0 : index
    %4 = vector.load %arg3[%c0_2, %c0_3] : memref<128x128xbf16, #tpu.memory_space<vmem>>, vector<128x128xbf16>
    %c0_4 = arith.constant 0 : index
    %c0_5 = arith.constant 0 : index
    %5 = vector.load %arg4[%c0_4, %c0_5] : memref<128x128xbf16, #tpu.memory_space<vmem>>, vector<128x128xbf16>
    %cst = arith.constant dense<0.000000e+00> : vector<128x128xf32>
    %6 = tpu.matmul %4, %5, %cst {dimension_numbers = #tpu.dot_dimension_numbers<[1], [0], [0], [1], [0, 0, 1, 1], [], []>} : vector<128x128xbf16>, vector<128x128xbf16>, vector<128x128xf32> -> vector<128x128xf32>
    %7 = arith.addf %3, %6 : vector<128x128xf32>
    %c0_6 = arith.constant 0 : index
    %c0_7 = arith.constant 0 : index
    %8 = vector.load %arg7[%c0_6, %c0_7] : memref<128x128xf32, #tpu.memory_space<vmem>>, vector<128x128xf32>
    tpu.vector_store %arg7[%c0_6, %c0_7], %7 {strides = array<i32>} : memref<128x128xf32, #tpu.memory_space<vmem>>, vector<128x128xf32>,
    %c1_i32 = arith.constant 1 : i32
    %9 = arith.cmpi eq, %arg2, %c1_i32 : i32
    %10 = arith.extui %9 : i1 to i32
    %c0_i32_8 = arith.constant 0 : i32
    %11 = arith.cmpi ne, %10, %c0_i32_8 : i32
    scf.if %11 {
      %c0_9 = arith.constant 0 : index
      %c0_10 = arith.constant 0 : index
      %12 = vector.load %arg7[%c0_9, %c0_10] : memref<128x128xf32, #tpu.memory_space<vmem>>, vector<128x128xf32>
      %c0_11 = arith.constant 0 : index
      %c0_12 = arith.constant 0 : index
      %13 = vector.load %arg5[%c0_11, %c0_12] : memref<1x128xf32, #tpu.memory_space<vmem>>, vector<1x128xf32>
      %14 = vector.broadcast %13 : vector<1x128xf32> to vector<128x128xf32>
      %15 = arith.addf %12, %14 : vector<128x128xf32>
      %c0_13 = arith.constant 0 : index
      %c0_14 = arith.constant 0 : index
      %16 = vector.load %arg6[%c0_13, %c0_14] : memref<128x128xf32, #tpu.memory_space<vmem>>, vector<128x128xf32>
      tpu.vector_store %arg6[%c0_13, %c0_14], %15 {strides = array<i32>} : memref<128x128xf32, #tpu.memory_space<vmem>>, vector<128x128xf32>,
    } else {
    }
    return
  }
  func.func @transform_0(%arg0: i32, %arg1: i32, %arg2: i32) -> (i32, i32) {
    %c0_i32 = arith.constant 0 : i32
    return %arg0, %arg2 : i32, i32
  }
  func.func @transform_1(%arg0: i32, %arg1: i32, %arg2: i32) -> (i32, i32) {
    %c0_i32 = arith.constant 0 : i32
    return %arg2, %arg1 : i32, i32
  }
  func.func @transform_2(%arg0: i32, %arg1: i32, %arg2: i32) -> (i32, i32) {
    %c0_i32 = arith.constant 0 : i32
    %c0_i32_0 = arith.constant 0 : i32
    return %c0_i32, %arg1 : i32, i32
  }
  func.func @transform_3(%arg0: i32, %arg1: i32, %arg2: i32) -> (i32, i32) {
    %c0_i32 = arith.constant 0 : i32
    return %arg0, %arg1 : i32, i32
  }
}

</mosaic_0001>

<bundles_post_ra>
// kernel: pallas_linear.1
= control target key start
LH: loop header
LB: loop body
LE: loop exit
PB: predicated region body
PF: predicated region fallthrough
CT: control target
= control target key end

     0   :  { %s1598_s0 = inlined_call_operand.vmem [shape: bf16[128,256], index: 0, kind: input, shape index: {}]   ;;  %s1599_s1 = inlined_call_operand.vmem [shape: bf16[256,256], index: 1, kind: input, shape index: {}]   ;;  %s1600_s2 = inlined_call_operand.vmem [shape: f32[1,256], index: 2, kind: input, shape index: {}]   ;;  %s1601_s3 = inlined_call_operand.hbm [shape: f32[128,256], index: 3, kind: output, shape index: {}]  }
   0x1   :  { %1605 = sst [smem:[#allocation11_spill]] %s1598_s0 }
   0x2   :  { %1606 = sst [smem:[#allocation12_spill]] %s1599_s1 }
   0x3   :  { %8 = vsyncpa [#allocation6], 0 }
   0x4   :  { %10 = vsyncpa [#allocation6 + $0x1], 0  ;;  %s1301_s12 = smov 0   ;;  %s1303_s13 = smov 0  }
   0x5   :  { %s1305_s14 = smov 0   ;;  %s1307_s15 = smov 0  }
   0x6   :  { %s1309_s16 = smov 0   ;;  %s1311_s17 = smov 0  }
   0x7   :  { %s1313_s18 = smov 0   ;;  %s1315_s19 = smov 0  }
   0x8   :  { %s1317_s20 = smov 0   ;;  %s1319_s21 = smov 0  }
   0x9   :  { %s1321_s22 = smov 0   ;;  %s1323_s23 = smov 0  }
   0xa LB: > { %1607 = sst [smem:[#allocation8_spill]] %s1270_s22  ;;  %s923_s24 = sadd.s32 4294967295, %s1274_s23   ;;  %s1274_s23 = sphi %s1323_s23, %s16_s23   ;;  %s1270_s22 = sphi %s1321_s22, %s1618_s22   ;;  %s1266_s21 = sphi %s1319_s21, %s1627_s21   ;;  %s1262_s20 = sphi %s1317_s20, %s1616_s20   ;;  %s1258_s19 = sphi %s1315_s19, %s1626_s19   ;;  %s1254_s18 = sphi %s1313_s18, %s1625_s18   ;;  %s1250_s17 = sphi %s1311_s17, %s1624_s17   ;;  %s1246_s16 = sphi %s1309_s16, %s1623_s16   ;;  %s1242_s15 = sphi %s1307_s15, %s1622_s15   ;;  %s1238_s14 = sphi %s1305_s14, %s1621_s14   ;;  %s1234_s13 = sphi %s1303_s13, %s1620_s13   ;;  %s1230_s12 = sphi %s1301_s12, %s1619_s12  }
   0xb   : > { %s924_s25 = sadd.s32 4294967294, %s1274_s23   ;;  %s28_s26 = sadd.s32 1, %s1266_s21 }
   0xc   : > { %s31_s27 = sadd.s32 1, %s1270_s22  ;;  %p29_p0 = scmp.ge.s32.totalorder %s28_s26, 2 }
   0xd   : > { %s44_s28 = sadd.s32 1, %s1254_s18  ;;  %p51_p1 = scmp.ne.s32.totalorder %s1254_s18, %s1250_s17 }
   0xe   : > { %p52_p2 = scmp.eq.s32.totalorder %s1274_s23, 0  ;;  %s1629_s26 = smov (%p29_p0, %s28_s26), 0 }
   0xf   : > { %1608 = sst [smem:[#allocation9_spill]] %s1629_s26  ;;  %s1631_s27 = smov (!%p29_p0, %s31_s27), %s1270_s22 }
  0x10   : > { %s40_s29 = ssub.s32 %s1266_s21, %s1629_s26  ;;  %p1374_p3 = por %p52_p2, %p51_p1 }
  0x11   : > { %p33_p4 = scmp.ge.s32.totalorder %s1631_s27, 2  ;;  %p42_p5 = scmp.eq.s32.totalorder %s40_s29, 0 }
  0x12   : > { %s72_s4 = sadd.s32 1, %s1246_s16  ;;  %p79_p6 = scmp.ne.s32.totalorder %s1246_s16, %s1242_s15 }
  0x13   : > { %s1633_s27 = smov (%p33_p4, %s1631_s27), 0  ;;  %s126_s9 = sadd.s32 1, %s1238_s14 }
  0x14   : > { %1610 = sst [smem:[#allocation10_spill]] %s1633_s27  ;;  %s68_s6 = ssub.s32 %s1270_s22, %s1633_s27 }
  0x15   : > { %s1384_s5 = scalar_select %p42_p5, %s1254_s18, %s44_s28  }
  0x16   : > { %p1388_p7 = por %p79_p6, %p52_p2  ;;  %s69_s8 = sor.u32 %s68_s6, %s40_s29 }
  0x17   : > { %p124_p8 = scmp.eq.s32.totalorder %s68_s6, 0  ;;  %p70_p9 = scmp.eq.s32.totalorder %s69_s8, 0 }
  0x18   : > { %p136_p10 = scmp.ne.s32.totalorder %s1238_s14, %s1234_s13  ;;  %p137_p11 = scmp.eq.s32.totalorder %s923_s24, 3 }
  0x19   : > { %s1394_s10 = scalar_select %p124_p8, %s1238_s14, %s126_s9  }
  0x1a   : > { %s1397_s11 = scalar_select %p70_p9, %s1246_s16, %s72_s4  }
  0x1b   : > { %p142_p12 = scmp.ne.s32.totalorder %s1234_s13, %s1230_s12  ;;  %p143_p13 = scmp.eq.s32.totalorder %s924_s25, 3 }
  0x1c   : > { %p1403_p0 = por %p137_p11, %p136_p10  ;;  %p926_p2 = scmp.ge.s32.totalorder %s1274_s23, 4 }
  0x1d   : > { %p1407_p1 = por %p143_p13, %p142_p12 }
  0x1e   : > { %159 = sbr.rel (%p926_p2) target bundleno = 77 (0x4d), region = 16 }
  0x25   : > { %162 = sbr.rel (!%p1374_p3) target bundleno = 57 (0x39), region = 20  ;;  %s164_s29 = sand.u32 (%p1374_p3), 1, %s1254_s18  }
  0x26   : > { %s928_s24 = sshll.u32 (%p1374_p3), %s1266_s21, 2  ;;  %s927_s4 = sshll.u32 (%p1374_p3), %s164_s29, 6 }
  0x27   : > { %s1614_s0 = sld [smem:[#allocation11_spill]] (%p1374_p3)  ;;  %s166_s30 = scalar_lea.vmem (%p1374_p3), [#allocation3], %s927_s4 }
  0x2d   : > { %s1419_s8 = scalar_lea.vmem %s1614_s0, %s928_s24 }
  0x2e   : > { %v187_v0 = vld [vmem:[%s1419_s8] sm:$0xf]  ;;  %v189_v1 = vld [vmem:[%s1419_s8 + $0x8] sm:$0xf]  ;;  %v191_v2 = vld [vmem:[%s1419_s8 + $0x10] sm:$0xf] }
  0x2f   : > { %188 = vst [vmem:[%s166_s30] sm:$0xf] %v187_v0  ;;  %190 = vst [vmem:[%s166_s30 + $0x4] sm:$0xf] %v189_v1  ;;  %v193_v3 = vld [vmem:[%s1419_s8 + $0x18] sm:$0xf] }
  0x30   : > { %v195_v4 = vld [vmem:[%s1419_s8 + $0x20] sm:$0xf]  ;;  %192 = vst [vmem:[%s166_s30 + $0x8] sm:$0xf] %v191_v2  ;;  %194 = vst [vmem:[%s166_s30 + $0xc] sm:$0xf] %v193_v3 }
  0x31   : > { %196 = vst [vmem:[%s166_s30 + $0x10] sm:$0xf] %v195_v4  ;;  %v197_v5 = vld [vmem:[%s1419_s8 + $0x28] sm:$0xf]  ;;  %v199_v6 = vld [vmem:[%s1419_s8 + $0x30] sm:$0xf] }
  0x32   : > { %v201_v7 = vld [vmem:[%s1419_s8 + $0x38] sm:$0xf]  ;;  %198 = vst [vmem:[%s166_s30 + $0x14] sm:$0xf] %v197_v5  ;;  %200 = vst [vmem:[%s166_s30 + $0x18] sm:$0xf] %v199_v6 }
  0x33   : > { %202 = vst [vmem:[%s166_s30 + $0x1c] sm:$0xf] %v201_v7  ;;  %v203_v8 = vld [vmem:[%s1419_s8 + $0x40] sm:$0xf]  ;;  %v205_v9 = vld [vmem:[%s1419_s8 + $0x48] sm:$0xf] }
  0x34   : > { %v207_v10 = vld [vmem:[%s1419_s8 + $0x50] sm:$0xf]  ;;  %204 = vst [vmem:[%s166_s30 + $0x20] sm:$0xf] %v203_v8  ;;  %206 = vst [vmem:[%s166_s30 + $0x24] sm:$0xf] %v205_v9 }
  0x35   : > { %208 = vst [vmem:[%s166_s30 + $0x28] sm:$0xf] %v207_v10  ;;  %v209_v11 = vld [vmem:[%s1419_s8 + $0x58] sm:$0xf]  ;;  %v211_v12 = vld [vmem:[%s1419_s8 + $0x60] sm:$0xf] }
  0x36   : > { %v213_v13 = vld [vmem:[%s1419_s8 + $0x68] sm:$0xf]  ;;  %210 = vst [vmem:[%s166_s30 + $0x2c] sm:$0xf] %v209_v11  ;;  %212 = vst [vmem:[%s166_s30 + $0x30] sm:$0xf] %v211_v12 }
  0x37   : > { %214 = vst [vmem:[%s166_s30 + $0x34] sm:$0xf] %v213_v13  ;;  %v215_v14 = vld [vmem:[%s1419_s8 + $0x70] sm:$0xf]  ;;  %v217_v15 = vld [vmem:[%s1419_s8 + $0x78] sm:$0xf] }
  0x38   : > { %216 = vst [vmem:[%s166_s30 + $0x38] sm:$0xf] %v215_v14  ;;  %218 = vst [vmem:[%s166_s30 + $0x3c] sm:$0xf] %v217_v15 }
  0x39 PF: > { %273 = sbr.rel (!%p1388_p7) target bundleno = 77 (0x4d), region = 61  ;;  %s275_s9 = sand.u32 (%p1388_p7), 1, %s1246_s16  }
  0x3a   : > { %s960_s29 = sshll.u32 (%p1388_p7), %s1266_s21, 5  ;;  %s929_s24 = sshll.u32 (%p1388_p7), %s275_s9, 6 }
  0x3b   : > { %s280_s4 = sadd.s32 (%p1388_p7), %s1270_s22, %s960_s29  ;;  %s1615_s1 = sld [smem:[#allocation12_spill]] (%p1388_p7) }
  0x3c   : > { %s932_s25 = sshll.u32 (%p1388_p7), %s280_s4, 2  ;;  %s277_s7 = scalar_lea.vmem (%p1388_p7), [#allocation4], %s929_s24 }
  0x41   : > { %s1445_s26 = scalar_lea.vmem %s1615_s1, %s932_s25 }
  0x42   : > { %v298_v16 = vld [vmem:[%s1445_s26] sm:$0xf]  ;;  %v300_v17 = vld [vmem:[%s1445_s26 + $0x8] sm:$0xf]  ;;  %v302_v18 = vld [vmem:[%s1445_s26 + $0x10] sm:$0xf] }
  0x43   : > { %299 = vst [vmem:[%s277_s7] sm:$0xf] %v298_v16  ;;  %301 = vst [vmem:[%s277_s7 + $0x4] sm:$0xf] %v300_v17  ;;  %v304_v19 = vld [vmem:[%s1445_s26 + $0x18] sm:$0xf] }
  0x44   : > { %303 = vst [vmem:[%s277_s7 + $0x8] sm:$0xf] %v302_v18  ;;  %v306_v20 = vld [vmem:[%s1445_s26 + $0x20] sm:$0xf]  ;;  %v308_v21 = vld [vmem:[%s1445_s26 + $0x28] sm:$0xf] }
  0x45   : > { %305 = vst [vmem:[%s277_s7 + $0xc] sm:$0xf] %v304_v19  ;;  %307 = vst [vmem:[%s277_s7 + $0x10] sm:$0xf] %v306_v20  ;;  %v310_v22 = vld [vmem:[%s1445_s26 + $0x30] sm:$0xf] }
  0x46   : > { %309 = vst [vmem:[%s277_s7 + $0x14] sm:$0xf] %v308_v21  ;;  %v312_v23 = vld [vmem:[%s1445_s26 + $0x38] sm:$0xf]  ;;  %v314_v24 = vld [vmem:[%s1445_s26 + $0x40] sm:$0xf] }
  0x47   : > { %311 = vst [vmem:[%s277_s7 + $0x18] sm:$0xf] %v310_v22  ;;  %313 = vst [vmem:[%s277_s7 + $0x1c] sm:$0xf] %v312_v23  ;;  %v316_v25 = vld [vmem:[%s1445_s26 + $0x48] sm:$0xf] }
  0x48   : > { %315 = vst [vmem:[%s277_s7 + $0x20] sm:$0xf] %v314_v24  ;;  %v318_v26 = vld [vmem:[%s1445_s26 + $0x50] sm:$0xf]  ;;  %v320_v27 = vld [vmem:[%s1445_s26 + $0x58] sm:$0xf] }
  0x49   : > { %317 = vst [vmem:[%s277_s7 + $0x24] sm:$0xf] %v316_v25  ;;  %319 = vst [vmem:[%s277_s7 + $0x28] sm:$0xf] %v318_v26  ;;  %v322_v28 = vld [vmem:[%s1445_s26 + $0x60] sm:$0xf] }
  0x4a   : > { %321 = vst [vmem:[%s277_s7 + $0x2c] sm:$0xf] %v320_v27  ;;  %v324_v29 = vld [vmem:[%s1445_s26 + $0x68] sm:$0xf]  ;;  %v326_v30 = vld [vmem:[%s1445_s26 + $0x70] sm:$0xf] }
  0x4b   : > { %323 = vst [vmem:[%s277_s7 + $0x30] sm:$0xf] %v322_v28  ;;  %325 = vst [vmem:[%s277_s7 + $0x34] sm:$0xf] %v324_v29  ;;  %v328_v31 = vld [vmem:[%s1445_s26 + $0x78] sm:$0xf] }
  0x4c   : > { %327 = vst [vmem:[%s277_s7 + $0x38] sm:$0xf] %v326_v30  ;;  %329 = vst [vmem:[%s277_s7 + $0x3c] sm:$0xf] %v328_v31 }
  0x4d PF: > { %p933_p3 = scmp.ge.s32.totalorder %s1274_s23, 1  ;;  %p389_p4 = scmp.lt.s32.totalorder %s1274_s23, 5 }
  0x4f   : > { %p390_p5 = pnand %p933_p3, %p389_p4 }
  0x50   : > { %s396_s0 = sand.u32 (!%p390_p5), 1, %s1250_s17   ;;  %s403_s8 = sand.u32 (!%p390_p5), 1, %s1242_s15  }
  0x51   : > { %393 = sbr.rel (%p390_p5) target bundleno = 394 (0x18a), region = 106  ;;  %s934_s30 = sshll.u32 (!%p390_p5), %s396_s0, 6 }
  0x52   : > { %s935_s9 = sshll.u32 (!%p390_p5), %s403_s8, 6  ;;  %s430_s26 = sand.u32 (!%p390_p5), 1, %s1234_s13  }
  0x53   : > { %p435_p6 = scmp.lt.s32.totalorder (!%p390_p5), %s1262_s20, 1  ;;  %s936_s29 = sshll.u32 (!%p390_p5), %s430_s26, 7 }
  0x54   : > { %s1478_s7 = scalar_lea.vmem (!%p390_p5), [#allocation3], %s934_s30  ;;  %s1480_s1 = scalar_lea.vmem (!%p390_p5), [#allocation4], %s935_s9 }
  0x55   : > { %s1482_s22 = scalar_lea.vmem (!%p390_p5), [#allocation5], %s936_s29  ;;  %p937_p7 = scmp.ne.s32.totalorder (!%p390_p5), %s1258_s19, 0 }
  0x58   : > { %s1472_s24 = scalar_select %p435_p6, %s1262_s20, 1 }
  0x59   : > { %443 = sbr.rel (%p937_p7) target bundleno = 98 (0x62), region = 118  ;;  %v1276_v32 = vmov (!%p937_p7), 0.0  }
  0x5a   : > { %s437_s6 = scalar_lea.vmem %s1600_s2, %s1472_s24  ;;  %444 = vst [vmem:[#allocation2] sm:$0xff] (!%p937_p7), %v1276_v32  ;;  %445 = vst [vmem:[#allocation2 + $0x8] sm:$0xff] (!%p937_p7), %v1276_v32 }
  0x5b   : > { %446 = vst [vmem:[#allocation2 + $0x10] sm:$0xff] (!%p937_p7), %v1276_v32  ;;  %447 = vst [vmem:[#allocation2 + $0x18] sm:$0xff] (!%p937_p7), %v1276_v32 }
  0x5c   : > { %448 = vst [vmem:[#allocation2 + $0x20] sm:$0xff] (!%p937_p7), %v1276_v32  ;;  %449 = vst [vmem:[#allocation2 + $0x28] sm:$0xff] (!%p937_p7), %v1276_v32 }
  0x5d   : > { %450 = vst [vmem:[#allocation2 + $0x30] sm:$0xff] (!%p937_p7), %v1276_v32  ;;  %451 = vst [vmem:[#allocation2 + $0x38] sm:$0xff] (!%p937_p7), %v1276_v32 }
  0x5e   : > { %452 = vst [vmem:[#allocation2 + $0x40] sm:$0xff] (!%p937_p7), %v1276_v32  ;;  %453 = vst [vmem:[#allocation2 + $0x48] sm:$0xff] (!%p937_p7), %v1276_v32 }
  0x5f   : > { %454 = vst [vmem:[#allocation2 + $0x50] sm:$0xff] (!%p937_p7), %v1276_v32  ;;  %455 = vst [vmem:[#allocation2 + $0x58] sm:$0xff] (!%p937_p7), %v1276_v32 }
  0x60   : > { %456 = vst [vmem:[#allocation2 + $0x60] sm:$0xff] %v1276_v32  ;;  %457 = vst [vmem:[#allocation2 + $0x68] sm:$0xff] %v1276_v32 }
  0x61   : > { %458 = vst [vmem:[#allocation2 + $0x70] sm:$0xff] %v1276_v32  ;;  %459 = vst [vmem:[#allocation2 + $0x78] sm:$0xff] %v1276_v32 }
  0x62 PF: > { %v1132_v33 = vld [vmem:[%s1480_s1] sm:$0xff]   ;;  %v1133_v34 = vld [vmem:[%s1480_s1 + $0x8] sm:$0xff]   ;;  %v1134_v35 = vld [vmem:[%s1480_s1 + $0x10] sm:$0xff]   ;;  %p954_p8 = scmp.ne.s32.totalorder %s1258_s19, 1 }
  0x63   : > { %977 = vmatprep.subr.bf16.mxu0 %v1132_v33  ;;  %1009 = vmatprep.subr.bf16.mxu1 %v1132_v33  ;;  %v1135_v36 = vld [vmem:[%s1480_s1 + $0x18] sm:$0xff]   ;;  %v1140_v37 = vld [vmem:[%s1478_s7] sm:$0xff]   ;;  %v1137_v40 = vld [vmem:[%s1480_s1 + $0x28] sm:$0xff]  }
  0x64   : > { %978 = vmatpush3.bf16.msra.mxu0 %v1132_v33  ;;  %1017 = vmatpush3.bf16.msra.mxu1 %v1132_v33  ;;  %v1141_v38 = vld [vmem:[%s1478_s7 + $0x20] sm:$0xff]   ;;  %v1138_v41 = vld [vmem:[%s1480_s1 + $0x30] sm:$0xff]   ;;  %v1139_v42 = vld [vmem:[%s1480_s1 + $0x38] sm:$0xff]  }
  0x65   : > { %979 = vmatprep.subr.bf16.mxu0 %v1133_v34  ;;  %1010 = vmatprep.subr.bf16.mxu1 %v1133_v34  ;;  %v1136_v39 = vld [vmem:[%s1480_s1 + $0x20] sm:$0xff]   ;;  %v1142_v43 = vld [vmem:[%s1478_s7 + $0x8] sm:$0xff]   ;;  %v1144_v45 = vld [vmem:[%s1478_s7 + $0x10] sm:$0xff]  }
  0x66   : > { %993 = vmatprep.mubr.bf16.mxu0 %v1140_v37  ;;  %1001 = vmatprep.mubr.bf16.mxu1 %v1141_v38  ;;  %v1143_v44 = vld [vmem:[%s1478_s7 + $0x28] sm:$0xff]   ;;  %v1145_v46 = vld [vmem:[%s1478_s7 + $0x30] sm:$0xff]   ;;  %v1146_v47 = vld [vmem:[%s1478_s7 + $0x18] sm:$0xff]  }
  0x67   : > { %v1147_v48 = vld [vmem:[%s1478_s7 + $0x38] sm:$0xff]   ;;  %v462_v49 = vld [vmem:[#allocation2 + $0x10] sm:$0xff]  ;;  %v460_v51 = vld [vmem:[#allocation2] sm:$0xff] }
  0x68   : > { %980 = vmatpush3.bf16.msra.mxu0 %v1133_v34  ;;  %1018 = vmatpush3.bf16.msra.mxu1 %v1133_v34  ;;  %v470_v50 = vld [vmem:[#allocation2 + $0x50] sm:$0xff]  ;;  %v468_v52 = vld [vmem:[#allocation2 + $0x40] sm:$0xff]  ;;  %v463_v55 = vld [vmem:[#allocation2 + $0x18] sm:$0xff] }
  0x69   : > { %981 = vmatprep.subr.bf16.mxu0 %v1134_v35  ;;  %1011 = vmatprep.subr.bf16.mxu1 %v1134_v35  ;;  %v471_v56 = vld [vmem:[#allocation2 + $0x58] sm:$0xff]  ;;  %v461_v61 = vld [vmem:[#allocation2 + $0x8] sm:$0xff]  ;;  %v466_v9 = vld [vmem:[#allocation2 + $0x30] sm:$0xff] }
  0x6a   : > { %v469_v62 = vld [vmem:[#allocation2 + $0x48] sm:$0xff]  ;;  %v474_v10 = vld [vmem:[#allocation2 + $0x70] sm:$0xff]  ;;  %v464_v11 = vld [vmem:[#allocation2 + $0x20] sm:$0xff] }
  0x6b   : > { %v472_v12 = vld [vmem:[#allocation2 + $0x60] sm:$0xff]  ;;  %v467_v15 = vld [vmem:[#allocation2 + $0x38] sm:$0xff]  ;;  %v465_v21 = vld [vmem:[#allocation2 + $0x28] sm:$0xff] }
  0x6c   : > { %982 = vmatpush3.bf16.msra.mxu0 %v1134_v35  ;;  %1019 = vmatpush3.bf16.msra.mxu1 %v1134_v35  ;;  %v475_v16 = vld [vmem:[#allocation2 + $0x78] sm:$0xff]  ;;  %v473_v22 = vld [vmem:[#allocation2 + $0x68] sm:$0xff]  ;;  %v955_v34 = vld [vmem:[%s437_s6] ss:$0 sm:$0xff] (!%p954_p8) }
  0x6d   : > { %983 = vmatprep.subr.bf16.mxu0 %v1135_v36  ;;  %1012 = vmatprep.subr.bf16.mxu1 %v1135_v36 }
  0x70   : > { %984 = vmatpush3.bf16.msra.mxu0 %v1135_v36  ;;  %1020 = vmatpush3.bf16.msra.mxu1 %v1135_v36 }
  0x71   : > { %985 = vmatprep.subr.bf16.mxu0 %v1136_v39  ;;  %1013 = vmatprep.subr.bf16.mxu1 %v1136_v39 }
  0x74   : > { %986 = vmatpush3.bf16.msra.mxu0 %v1136_v39  ;;  %1021 = vmatpush3.bf16.msra.mxu1 %v1136_v39 }
  0x75   : > { %987 = vmatprep.subr.bf16.mxu0 %v1137_v40  ;;  %1014 = vmatprep.subr.bf16.mxu1 %v1137_v40 }
  0x78   : > { %988 = vmatpush3.bf16.msra.mxu0 %v1137_v40  ;;  %1022 = vmatpush3.bf16.msra.mxu1 %v1137_v40 }
  0x79   : > { %989 = vmatprep.subr.bf16.mxu0 %v1138_v41  ;;  %1015 = vmatprep.subr.bf16.mxu1 %v1138_v41 }
  0x7c   : > { %990 = vmatpush3.bf16.msra.mxu0 %v1138_v41  ;;  %1023 = vmatpush3.bf16.msra.mxu1 %v1138_v41 }
  0x7d   : > { %991 = vmatprep.subr.bf16.mxu0 %v1139_v42  ;;  %1016 = vmatprep.subr.bf16.mxu1 %v1139_v42 }
  0x80   : > { %992 = vmatpush3.bf16.msra.mxu0 %v1139_v42  ;;  %1024 = vmatpush3.bf16.msra.mxu1 %v1139_v42 }
  0x83   : > { %994 = vmatmul.mubr.bf16.vlgmr.msra.gmra.mrb[0].mxu0 %v1142_v43  ;;  %1002 = vmatmul.mubr.bf16.vlgmr.msra.gmra.mrb[0].mxu1 %v1143_v44 }
  0x84   : > { %997 = vmatprep.mubr.bf16.mxu0 %v1144_v45  ;;  %1005 = vmatprep.mubr.bf16.mxu1 %v1145_v46 }
  0x8b   : > { %998 = vmatmul.mubr.bf16.gmra.mrb[4].mxu0 %v1146_v47  ;;  %1006 = vmatmul.mubr.bf16.gmra.mrb[4].mxu1 %v1147_v48 }
 0x156   : > { %v995_v53 = vpop.f32.mrb[0].mxu0  ;;  %v1003_v54 = vpop.f32.mrb[0].mxu1 }
 0x157   : > { %v703_v57 = vadd.f32 %v995_v53, %v462_v49  ;;  %v711_v58 = vadd.f32 %v1003_v54, %v470_v50  ;;  %v638_v59 = vpop.f32.mrb[1].mxu0  ;;  %v670_v60 = vpop.f32.mrb[1].mxu1 }
 0x158   : > { %v701_v63 = vadd.f32 %v638_v59, %v460_v51  ;;  %v709_v0 = vadd.f32 %v670_v60, %v468_v52  ;;  %v996_v1 = vpop.f32.mrb[2].mxu0  ;;  %v1004_v2 = vpop.f32.mrb[2].mxu1 }
 0x159   : > { %719 = vst [vmem:[#allocation2 + $0x10] sm:$0xff] %v703_v57  ;;  %727 = vst [vmem:[#allocation2 + $0x50] sm:$0xff] %v711_v58  ;;  %v704_v3 = vadd.f32 %v996_v1, %v463_v55  ;;  %v712_v4 = vadd.f32 %v1004_v2, %v471_v56  ;;  %v641_v5 = vpop.f32.mrb[3].mxu0  ;;  %v673_v6 = vpop.f32.mrb[3].mxu1 }
 0x15a   : > { %717 = vst [vmem:[#allocation2] sm:$0xff] %v701_v63  ;;  %725 = vst [vmem:[#allocation2 + $0x40] sm:$0xff] %v709_v0  ;;  %v702_v7 = vadd.f32 %v641_v5, %v461_v61  ;;  %v710_v8 = vadd.f32 %v673_v6, %v469_v62 }
 0x15b   : > { %720 = vst [vmem:[#allocation2 + $0x18] sm:$0xff] %v704_v3  ;;  %728 = vst [vmem:[#allocation2 + $0x58] sm:$0xff] %v712_v4 }
 0x15c   : > { %718 = vst [vmem:[#allocation2 + $0x8] sm:$0xff] %v702_v7  ;;  %726 = vst [vmem:[#allocation2 + $0x48] sm:$0xff] %v710_v8 }
 0x15e   : > { %v999_v13 = vpop.f32.mrb[4].mxu0  ;;  %v1007_v14 = vpop.f32.mrb[4].mxu1  ;;  %736 = sbr.rel (%p954_p8) target bundleno = 368 (0x170), region = 122 }
 0x15f   : > { %v707_v17 = vadd.f32 %v999_v13, %v466_v9  ;;  %v715_v18 = vadd.f32 %v1007_v14, %v474_v10  ;;  %v654_v19 = vpop.f32.mrb[5].mxu0  ;;  %v686_v20 = vpop.f32.mrb[5].mxu1 }
 0x160   : > { %v705_v23 = vadd.f32 %v654_v19, %v464_v11  ;;  %v713_v24 = vadd.f32 %v686_v20, %v472_v12  ;;  %v1000_v25 = vpop.f32.mrb[6].mxu0  ;;  %v1008_v26 = vpop.f32.mrb[6].mxu1  ;;  %v739_v38 = vld [vmem:[#allocation2 + $0x10] sm:$0xff] (!%p954_p8) }
 0x161   : > { %723 = vst [vmem:[#allocation2 + $0x30] sm:$0xff] %v707_v17  ;;  %731 = vst [vmem:[#allocation2 + $0x70] sm:$0xff] %v715_v18  ;;  %v708_v27 = vadd.f32 %v1000_v25, %v467_v15  ;;  %v716_v28 = vadd.f32 %v1008_v26, %v475_v16  ;;  %v657_v29 = vpop.f32.mrb[7].mxu0  ;;  %v689_v30 = vpop.f32.mrb[7].mxu1  ;;  %v737_v33 = vld [vmem:[#allocation2] sm:$0xff] (!%p954_p8)  ;;  %v762_v41 = vadd.f32 (!%p954_p8), %v955_v34, %v739_v38  ;;  %v747_v52 = vld [vmem:[#allocation2 + $0x50] sm:$0xff] (!%p954_p8) }
 0x162   : > { %721 = vst [vmem:[#allocation2 + $0x20] sm:$0xff] %v705_v23  ;;  %729 = vst [vmem:[#allocation2 + $0x60] sm:$0xff] %v713_v24  ;;  %v706_v31 = vadd.f32 %v657_v29, %v465_v21  ;;  %v714_v32 = vadd.f32 %v689_v30, %v473_v22  ;;  %v760_v36 = vadd.f32 (!%p954_p8), %v955_v34, %v737_v33  ;;  %v740_v39 = vld [vmem:[#allocation2 + $0x18] sm:$0xff] (!%p954_p8)  ;;  %v745_v50 = vld [vmem:[#allocation2 + $0x40] sm:$0xff] (!%p954_p8) }
 0x163   : > { %724 = vst [vmem:[#allocation2 + $0x38] sm:$0xff] %v708_v27  ;;  %732 = vst [vmem:[#allocation2 + $0x78] sm:$0xff] %v716_v28  ;;  %v738_v35 = vld [vmem:[#allocation2 + $0x8] sm:$0xff] (!%p954_p8)  ;;  %v763_v42 = vadd.f32 (!%p954_p8), %v955_v34, %v740_v39  ;;  %v768_v53 = vadd.f32 (!%p954_p8), %v955_v34, %v745_v50  ;;  %v770_v55 = vadd.f32 (!%p954_p8), %v955_v34, %v747_v52  ;;  %v748_v56 = vld [vmem:[#allocation2 + $0x58] sm:$0xff] (!%p954_p8) }
 0x164   : > { %722 = vst [vmem:[#allocation2 + $0x28] sm:$0xff] %v706_v31  ;;  %730 = vst [vmem:[#allocation2 + $0x68] sm:$0xff] %v714_v32  ;;  %v761_v37 = vadd.f32 (!%p954_p8), %v955_v34, %v738_v35  ;;  %v746_v51 = vld [vmem:[#allocation2 + $0x48] sm:$0xff] (!%p954_p8)  ;;  %v771_v59 = vadd.f32 (!%p954_p8), %v955_v34, %v748_v56 }
 0x165   : > { %776 = vst [vmem:[%s1482_s22] sm:$0xff] %v760_v36  ;;  %778 = vst [vmem:[%s1482_s22 + $0x10] sm:$0xff] %v762_v41  ;;  %v769_v54 = vadd.f32 %v955_v34, %v746_v51 }
 0x166   : > { %777 = vst [vmem:[%s1482_s22 + $0x8] sm:$0xff] %v761_v37  ;;  %779 = vst [vmem:[%s1482_s22 + $0x18] sm:$0xff] %v763_v42 }
 0x167   : > { %784 = vst [vmem:[%s1482_s22 + $0x40] sm:$0xff] %v768_v53  ;;  %785 = vst [vmem:[%s1482_s22 + $0x48] sm:$0xff] %v769_v54 }
 0x168   : > { %v743_v45 = vld [vmem:[#allocation2 + $0x30] sm:$0xff]  ;;  %786 = vst [vmem:[%s1482_s22 + $0x50] sm:$0xff] %v770_v55  ;;  %787 = vst [vmem:[%s1482_s22 + $0x58] sm:$0xff] %v771_v59 }
 0x169   : > { %v741_v40 = vld [vmem:[#allocation2 + $0x20] sm:$0xff]  ;;  %v766_v48 = vadd.f32 %v955_v34, %v743_v45  ;;  %v751_v62 = vld [vmem:[#allocation2 + $0x70] sm:$0xff] }
 0x16a   : > { %v764_v43 = vadd.f32 %v955_v34, %v741_v40  ;;  %v744_v46 = vld [vmem:[#allocation2 + $0x38] sm:$0xff]  ;;  %v749_v57 = vld [vmem:[#allocation2 + $0x60] sm:$0xff]  ;;  %v774_v0 = vadd.f32 %v955_v34, %v751_v62 }
 0x16b   : > { %v742_v44 = vld [vmem:[#allocation2 + $0x28] sm:$0xff]  ;;  %v767_v49 = vadd.f32 %v955_v34, %v744_v46  ;;  %782 = vst [vmem:[%s1482_s22 + $0x30] sm:$0xff] %v766_v48  ;;  %v772_v60 = vadd.f32 %v955_v34, %v749_v57  ;;  %v752_v63 = vld [vmem:[#allocation2 + $0x78] sm:$0xff] }
 0x16c   : > { %v765_v47 = vadd.f32 %v955_v34, %v742_v44  ;;  %780 = vst [vmem:[%s1482_s22 + $0x20] sm:$0xff] %v764_v43  ;;  %v750_v58 = vld [vmem:[#allocation2 + $0x68] sm:$0xff]  ;;  %v775_v1 = vadd.f32 %v955_v34, %v752_v63  ;;  %790 = vst [vmem:[%s1482_s22 + $0x70] sm:$0xff] %v774_v0 }
 0x16d   : > { %783 = vst [vmem:[%s1482_s22 + $0x38] sm:$0xff] %v767_v49  ;;  %v773_v61 = vadd.f32 %v955_v34, %v750_v58  ;;  %788 = vst [vmem:[%s1482_s22 + $0x60] sm:$0xff] %v772_v60 }
 0x16e   : > { %781 = vst [vmem:[%s1482_s22 + $0x28] sm:$0xff] %v765_v47  ;;  %791 = vst [vmem:[%s1482_s22 + $0x78] sm:$0xff] %v775_v1 }
 0x16f   : > { %789 = vst [vmem:[%s1482_s22 + $0x68] sm:$0xff] %v773_v61 }
 0x170 PF: > { %s957_s17 = sshll.u32 %s1262_s20, 7  ;;  %s808_s30 = sshll.u32 %s1482_s22, 4  ;;  %s1530_s30 = int_to_ptr.vmem [resolvable:$true] %s808_s30 }
 0x171   : > { %s1527_s8 = scalar_lea.hbm %s1601_s3, %s957_s17  ;;  %s1534_s9 = scalar_lea.sflag [#allocation6], %s430_s26 }
 0x172   : > { %s1148_s29 = scalar_lea.vmem %s1530_s30, 2048  ;;  %s1277_s20 = smov [#allocation5]  }
 0x173   : > { %p1149_p9 = scmp.ne.s32.totalorder %s1530_s30, %s1148_s29  ;;  %s1152_s24 = sshll.u32 %s1277_s20, 4  ;;  %s1153_s24 = int_to_ptr.vmem [resolvable:$false] %s1152_s24 }
 0x174   : > { %s1154_s4 = scalar_lea.vmem %s1153_s24, 4096  ;;  %p1155_p12 = scmp.lt.s32.totalorder %s1530_s30, %s1153_s24 }
 0x175   : > { %p1150_p10 = pnand %p1149_p9, %p1403_p0  ;;  %p1156_p13 = scmp.lt.s32.totalorder %s1154_s4, %s1148_s29 }
 0x177   : > { %p1151_p11 = pneg %p1150_p10  ;;  %p1157_p2 = por %p1156_p13, %p1155_p12 }
 0x179   : > { %p1158_p3 = pnand %p1157_p2, %p1151_p11 }
 0x17b   : > { %1161 = shalt.err (!%p1158_p3)
}
 0x17c   : > { %s1162_s22 = scalar_lea.hbm %s1527_s8, 2048  ;;  %s1166_s6 = scalar_lea.hbm %s1601_s3, 4096 }
 0x17d   : > { %p1163_p4 = scmp.ne.s32.totalorder %s1527_s8, %s1162_s22  ;;  %p1167_p7 = scmp.lt.u32.totalorder %s1527_s8, %s1601_s3 }
 0x17e   : > { %p1168_p8 = scmp.lt.u32.totalorder %s1166_s6, %s1162_s22  ;;  %p1170_p10 = scmp.lt.u32.totalorder %s1162_s22, %s1527_s8 }
 0x17f   : > { %p1164_p5 = pnand %p1163_p4, %p1403_p0 }
 0x180   : > { %p1169_p9 = por %p1168_p8, %p1167_p7 }
 0x181   : > { %p1165_p6 = pneg %p1164_p5 }
 0x182   : > { %p1171_p11 = por %p1170_p10, %p1169_p9 }
 0x184   : > { %p1172_p12 = pnand %p1171_p11, %p1165_p6 }
 0x186   : > { %1175 = shalt.err (!%p1172_p12)
}
 0x187   : > { %s1278_s15 = smov 128   ;;  %s1279_s17 = smov 256  }
 0x188   : > { %s1280_s19 = smov 8  }
 0x189   : > { %1025 = dma.vmem_to_hbm [thread:$0]  (%p1403_p0), %s1530_s30, 2048, %s1527_s8, %s1534_s9, %s1278_s15, %s1279_s17, %s1280_s19  }
 0x18a PF: > { %p1031_p13 = scmp.ge.s32.totalorder %s1274_s23, 2  ;;  %s823_s0 = sand.u32 1, %s1230_s12  }
 0x18b   : > { %s824_s29 = scalar_lea.sflag [#allocation6], %s823_s0 }
 0x18c   : > { %p1028_p2 = pnand %p1031_p13, %p1407_p1 }
 0x18e   : > { %1225 = dma.done.wait (!%p1028_p2), %s824_s29, 2048  }
 0x18f   : > { %1227 = vsyncadd (!%p1028_p2), %s824_s29, 4294965248  ;;  %s16_s23 = sadd.s32 1, %s1274_s23   ;;  %s1616_s20 = sld [smem:[#allocation8_spill]] }
 0x190   : > { %p13_p3 = scmp.ge.s32.totalorder %s16_s23, 6   ;;  %s1617_s28 = sld [smem:[#allocation9_spill]] }
 0x191   : > { %s1618_s22 = sld [smem:[#allocation10_spill]]  ;;  %s1619_s12 = smov %s1234_s13 }
 0x192   : > { %s1620_s13 = smov %s1238_s14  ;;  %s1621_s14 = smov %s1394_s10 }
 0x193   : > { %s1622_s15 = smov %s1246_s16  ;;  %s1623_s16 = smov %s1397_s11 }
 0x194   : > { %s1624_s17 = smov %s1254_s18  ;;  %s1625_s18 = smov %s1384_s5 }
 0x195   : > { %s1626_s19 = smov %s1266_s21  ;;  %15 = sbr.rel (!%p13_p3) target bundleno = 10 (0xa), region = 173 }
 0x196   : > { %s1627_s21 = smov %s1617_s28 }
 0x19c   :  { %829 = vsyncpa [#allocation6], 1 }
 0x19d   :  { %831 = vsyncpa [#allocation6 + $0x1], 1 }

</bundles_post_ra>
